<compile_context>
chip_gen: v7x
topology: tpu7x:2x2x1
jax: 0.10.0
libtpu: 0.0.40
codegen_flags: <defaults>
</compile_context>

<pallas_src>
import math

import jax
import jax.numpy as jnp
from jax import lax
from jax.experimental import pallas as pl
from jax.experimental.pallas import tpu as pltpu

_LN_EPS = 1e-5          # torch.nn.LayerNorm default
_TILE_B = 512           # batch tile: ~85% HBM roofline, safe on v5e/v6e/v7x


# ----------------------------------------------------------------------------
# Fused MLP kernel (whole forward pass for one batch tile)
# ----------------------------------------------------------------------------
def _make_mlp_kernel(num_layer):
    """Kernel arg order:
       x, [w_i, b_i, ln_w_i, ln_b_i] * num_layer, w_out_t, b_out, out"""

    def kernel(*refs):
        x_ref = refs[0]
        out_ref = refs[-1]
        h = x_ref[...].astype(jnp.float32)          # cast in-kernel (free VPU)
        idx = 1
        for _ in range(num_layer):
            w = refs[idx][...]                      # (in, hidden), pre-transposed
            b = refs[idx + 1][...]                  # (1, hidden)
            ln_w = refs[idx + 2][...]               # (1, hidden)
            ln_b = refs[idx + 3][...]               # (1, hidden)
            idx += 4
            # Linear -> LayerNorm (one-pass stats) -> ReLU
            h = jnp.dot(h, w, preferred_element_type=jnp.float32) + b
            mu = jnp.mean(h, axis=-1, keepdims=True)
            mu2 = jnp.mean(h * h, axis=-1, keepdims=True)
            var = jnp.maximum(mu2 - mu * mu, 0.0)
            h = (h - mu) * lax.rsqrt(var + _LN_EPS) * ln_w + ln_b
            h = jnp.maximum(h, 0.0)
            # TODO(synk): nn.Dropout runs in eval mode (identity); stochastic
            # training-mode dropout is not implemented.
        w_out_t = refs[idx][...]                    # (dim_pred, hidden)
        b_out = refs[idx + 1][...]                  # (dim_pred, 1)
        # Transposed final projection: contract hidden dim of both operands so
        # the result is (dim_pred, TILE_B) -- batch along lanes, dense store.
        out = lax.dot_general(
            w_out_t, h,
            dimension_numbers=(((1,), (1,)), ((), ())),
            preferred_element_type=jnp.float32)
        out_ref[...] = out + b_out

    return kernel


# ----------------------------------------------------------------------------
# Parameter init (PyTorch nn.Linear / nn.LayerNorm defaults)
# ----------------------------------------------------------------------------
def _linear_init(key, fan_in, fan_out, transpose_out=False):
    kw, kb = jax.random.split(key)
    bound = 1.0 / math.sqrt(fan_in)
    if transpose_out:
        # torch layout (out, in) -- used for the final projection
        w = jax.random.uniform(kw, (fan_out, fan_in), jnp.float32, -bound, bound)
        b = jax.random.uniform(kb, (fan_out, 1), jnp.float32, -bound, bound)
    else:
        # pre-transposed (in, out) for h @ w
        w = jax.random.uniform(kw, (fan_in, fan_out), jnp.float32, -bound, bound)
        b = jax.random.uniform(kb, (1, fan_out), jnp.float32, -bound, bound)
    return w, b


def init_mlp_params(key, dim_in=256, dim_hidden=128, dim_pred=1, num_layer=1):
    layers = []
    in_features = dim_in
    for _ in range(num_layer):
        key, sub = jax.random.split(key)
        w, b = _linear_init(sub, in_features, dim_hidden)
        layers.append(
            dict(w=w, b=b,
                 ln_w=jnp.ones((1, dim_hidden), jnp.float32),
                 ln_b=jnp.zeros((1, dim_hidden), jnp.float32)))
        in_features = dim_hidden
    key, sub = jax.random.split(key)
    w_out_t, b_out = _linear_init(sub, dim_hidden, dim_pred, transpose_out=True)
    return dict(layers=layers, w_out_t=w_out_t, b_out=b_out,
                dim_pred=dim_pred, num_layer=num_layer)


# ----------------------------------------------------------------------------
# Forward wrapper: one fused pallas_call, batch-tiled grid
# ----------------------------------------------------------------------------
def mlp_forward(params, x, *, tile_b=_TILE_B):
    B, dim_in = x.shape
    dim_pred = params["dim_pred"]
    num_layer = params["num_layer"]

    # Pick the batch tile and pad B so the grid divides evenly.
    if B > tile_b:
        tb = tile_b
        pad_b = pl.cdiv(B, tb) * tb
    else:
        pad_b = max(8, pl.cdiv(B, 8) * 8)   # sublane alignment
        tb = pad_b
    if pad_b != B:
        x = jnp.pad(x, ((0, pad_b - B), (0, 0)))

    flat = []
    for layer in params["layers"]:
        flat += [layer["w"], layer["b"], layer["ln_w"], layer["ln_b"]]
    flat += [params["w_out_t"], params["b_out"]]

    grid = (pad_b // tb,)
    in_specs = [pl.BlockSpec((tb, dim_in), lambda i: (i, 0))]
    # Constant block index -> parameters stay VMEM-resident across batch tiles.
    for p in flat:
        in_specs.append(pl.BlockSpec(p.shape, lambda i: (0, 0)))
    out_spec = pl.BlockSpec((dim_pred, tb), lambda i: (0, i))

    kernel = _make_mlp_kernel(num_layer)
    out_t = pl.pallas_call(
        kernel,
        out_shape=jax.ShapeDtypeStruct((dim_pred, pad_b), jnp.float32),
        grid=grid,
        in_specs=in_specs,
        out_specs=out_spec,
        compiler_params=pltpu.CompilerParams(
            dimension_semantics=("parallel",)),
    )(x, *flat)

    # (dim_pred, pad_b) -> (B, dim_pred); for dim_pred=1 this is just a reshape.
    return out_t[:, :B].T


# ----------------------------------------------------------------------------
# Pure-JAX reference (torch-style two-pass LayerNorm, for correctness check)
# ----------------------------------------------------------------------------
def mlp_reference(params, x):
    h = x.astype(jnp.float32)
    for layer in params["layers"]:
        h = h @ layer["w"] + layer["b"]
        mu = jnp.mean(h, axis=-1, keepdims=True)
        var = jnp.mean((h - mu) ** 2, axis=-1, keepdims=True)
        h = (h - mu) * lax.rsqrt(var + _LN_EPS) * layer["ln_w"] + layer["ln_b"]
        h = jnp.maximum(h, 0.0)
    return h @ params["w_out_t"].T + params["b_out"].T


# ----------------------------------------------------------------------------
if __name__ == "__main__":
    key = jax.random.PRNGKey(0)
    k_x, k_x2, k_p = jax.random.split(key, 3)

    dim_in, dim_hidden, dim_pred, num_layer = 256, 128, 1, 1
    params = init_mlp_params(k_p, dim_in, dim_hidden, dim_pred, num_layer)

    # Small batch (single grid step) -- matches the module's typical use.
    x_small = jax.random.normal(k_x, (8, dim_in), jnp.float32)
    out_small = mlp_forward(params, x_small)
    jax.block_until_ready(out_small)
    ref_small = mlp_reference(params, x_small)
    assert out_small.shape == (8, dim_pred)
    assert bool(jnp.all(jnp.isfinite(out_small)))
    assert bool(jnp.allclose(out_small, ref_small, atol=1e-5, rtol=1e-5))

    # Larger batch -- exercises the multi-step grid + remainder padding path.
    x_large = jax.random.normal(k_x2, (600, dim_in), jnp.float32)
    out_large = mlp_forward(params, x_large)
    jax.block_until_ready(out_large)
    ref_large = mlp_reference(params, x_large)
    assert out_large.shape == (600, dim_pred)
    assert bool(jnp.all(jnp.isfinite(out_large)))
    assert bool(jnp.allclose(out_large, ref_large, atol=1e-5, rtol=1e-5))

    print("KERNEL_OK")
</pallas_src>

<mosaic_0001>
module attributes {stable_mosaic.version = 11 : i64} {
  func.func @kernel(%arg0: i32, %arg1: memref<8x256xf32, #tpu.memory_space<vmem>>, %arg2: memref<256x128xf32, #tpu.memory_space<vmem>>, %arg3: memref<1x128xf32, #tpu.memory_space<vmem>>, %arg4: memref<1x128xf32, #tpu.memory_space<vmem>>, %arg5: memref<1x128xf32, #tpu.memory_space<vmem>>, %arg6: memref<1x128xf32, #tpu.memory_space<vmem>>, %arg7: memref<1x1xf32, #tpu.memory_space<vmem>>, %arg8: memref<1x8xf32, #tpu.memory_space<vmem>>) attributes {dimension_semantics = [#tpu.dimension_semantics<parallel>], iteration_bounds = array<i64: 1>, scalar_prefetch = 0 : i64, scratch_operands = 0 : i64, tpu.core_type = #tpu.core_type<tc>, window_params = [{transform_indices = @transform_0, window_bounds = array<i64: 8, 256>}, {pipeline_mode = #tpu.pipeline_mode<synchronous>, transform_indices = @transform_1, window_bounds = array<i64: 256, 128>}, {pipeline_mode = #tpu.pipeline_mode<synchronous>, transform_indices = @transform_2, window_bounds = array<i64: 1, 128>}, {pipeline_mode = #tpu.pipeline_mode<synchronous>, transform_indices = @transform_3, window_bounds = array<i64: 1, 128>}, {pipeline_mode = #tpu.pipeline_mode<synchronous>, transform_indices = @transform_4, window_bounds = array<i64: 1, 128>}, {pipeline_mode = #tpu.pipeline_mode<synchronous>, transform_indices = @transform_5, window_bounds = array<i64: 1, 128>}, {pipeline_mode = #tpu.pipeline_mode<synchronous>, transform_indices = @transform_6, window_bounds = array<i64: 1, 1>}, {transform_indices = @transform_7, window_bounds = array<i64: 1, 8>}]} {
    %c0 = arith.constant 0 : index
    %c0_0 = arith.constant 0 : index
    %0 = vector.load %arg1[%c0, %c0_0] : memref<8x256xf32, #tpu.memory_space<vmem>>, vector<8x256xf32>
    %c0_1 = arith.constant 0 : index
    %c0_2 = arith.constant 0 : index
    %1 = vector.load %arg2[%c0_1, %c0_2] : memref<256x128xf32, #tpu.memory_space<vmem>>, vector<256x128xf32>
    %c0_3 = arith.constant 0 : index
    %c0_4 = arith.constant 0 : index
    %2 = vector.load %arg3[%c0_3, %c0_4] : memref<1x128xf32, #tpu.memory_space<vmem>>, vector<1x128xf32>
    %c0_5 = arith.constant 0 : index
    %c0_6 = arith.constant 0 : index
    %3 = vector.load %arg4[%c0_5, %c0_6] : memref<1x128xf32, #tpu.memory_space<vmem>>, vector<1x128xf32>
    %c0_7 = arith.constant 0 : index
    %c0_8 = arith.constant 0 : index
    %4 = vector.load %arg5[%c0_7, %c0_8] : memref<1x128xf32, #tpu.memory_space<vmem>>, vector<1x128xf32>
    %cst = arith.constant dense<0.000000e+00> : vector<8x128xf32>
    %5 = tpu.matmul %0, %1, %cst {dimension_numbers = #tpu.dot_dimension_numbers<[1], [0], [0], [1], [0, 0, 1, 1], [], []>} : vector<8x256xf32>, vector<256x128xf32>, vector<8x128xf32> -> vector<8x128xf32>
    %6 = vector.broadcast %2 : vector<1x128xf32> to vector<8x128xf32>
    %7 = arith.addf %5, %6 : vector<8x128xf32>
    %cst_9 = arith.constant dense<0.000000e+00> : vector<8xf32>
    %8 = vector.multi_reduction <add>, %7, %cst_9 [1] : vector<8x128xf32> to vector<8xf32>
    %9 = vector.shape_cast %8 : vector<8xf32> to vector<8x1xf32>
    %cst_10 = arith.constant 1.280000e+02 : f32
    %10 = vector.broadcast %cst_10 : f32 to vector<8x1xf32>
    %11 = arith.divf %9, %10 : vector<8x1xf32>
    %12 = arith.mulf %7, %7 : vector<8x128xf32>
    %cst_11 = arith.constant dense<0.000000e+00> : vector<8xf32>
    %13 = vector.multi_reduction <add>, %12, %cst_11 [1] : vector<8x128xf32> to vector<8xf32>
    %14 = vector.shape_cast %13 : vector<8xf32> to vector<8x1xf32>
    %cst_12 = arith.constant 1.280000e+02 : f32
    %15 = vector.broadcast %cst_12 : f32 to vector<8x1xf32>
    %16 = arith.divf %14, %15 : vector<8x1xf32>
    %17 = arith.mulf %11, %11 : vector<8x1xf32>
    %18 = arith.subf %16, %17 : vector<8x1xf32>
    %cst_13 = arith.constant 0.000000e+00 : f32
    %19 = vector.broadcast %cst_13 : f32 to vector<8x1xf32>
    %20 = arith.maximumf %18, %19 : vector<8x1xf32>
    %21 = vector.broadcast %11 : vector<8x1xf32> to vector<8x128xf32>
    %22 = arith.subf %7, %21 : vector<8x128xf32>
    %cst_14 = arith.constant 9.99999974E-6 : f32
    %23 = vector.broadcast %cst_14 : f32 to vector<8x1xf32>
    %24 = arith.addf %20, %23 : vector<8x1xf32>
    %25 = math.rsqrt %24 : vector<8x1xf32>
    %26 = vector.broadcast %25 : vector<8x1xf32> to vector<8x128xf32>
    %27 = arith.mulf %22, %26 : vector<8x128xf32>
    %28 = vector.broadcast %3 : vector<1x128xf32> to vector<8x128xf32>
    %29 = arith.mulf %27, %28 : vector<8x128xf32>
    %30 = vector.broadcast %4 : vector<1x128xf32> to vector<8x128xf32>
    %31 = arith.addf %29, %30 : vector<8x128xf32>
    %cst_15 = arith.constant 0.000000e+00 : f32
    %32 = vector.broadcast %cst_15 : f32 to vector<8x128xf32>
    %33 = arith.maximumf %31, %32 : vector<8x128xf32>
    %c0_16 = arith.constant 0 : index
    %c0_17 = arith.constant 0 : index
    %34 = vector.load %arg6[%c0_16, %c0_17] : memref<1x128xf32, #tpu.memory_space<vmem>>, vector<1x128xf32>
    %c0_18 = arith.constant 0 : index
    %c0_19 = arith.constant 0 : index
    %35 = vector.load %arg7[%c0_18, %c0_19] : memref<1x1xf32, #tpu.memory_space<vmem>>, vector<1x1xf32>
    %cst_20 = arith.constant dense<0.000000e+00> : vector<1x8xf32>
    %36 = tpu.matmul %34, %33, %cst_20 {dimension_numbers = #tpu.dot_dimension_numbers<[1], [1], [0], [0], [0, 0, 1, 0], [], []>} : vector<1x128xf32>, vector<8x128xf32>, vector<1x8xf32> -> vector<1x8xf32>
    %37 = vector.broadcast %35 : vector<1x1xf32> to vector<1x8xf32>
    %38 = arith.addf %36, %37 : vector<1x8xf32>
    %c0_21 = arith.constant 0 : index
    %c0_22 = arith.constant 0 : index
    %39 = vector.load %arg8[%c0_21, %c0_22] : memref<1x8xf32, #tpu.memory_space<vmem>>, vector<1x8xf32>
    tpu.vector_store %arg8[%c0_21, %c0_22], %38 {strides = array<i32>} : memref<1x8xf32, #tpu.memory_space<vmem>>, vector<1x8xf32>,
    return
  }
  func.func @transform_0(%arg0: i32) -> (i32, i32) {
    %c0_i32 = arith.constant 0 : i32
    %c0_i32_0 = arith.constant 0 : i32
    return %arg0, %c0_i32 : i32, i32
  }
  func.func @transform_1(%arg0: i32) -> (i32, i32) {
    %c0_i32 = arith.constant 0 : i32
    %c0_i32_0 = arith.constant 0 : i32
    %c0_i32_1 = arith.constant 0 : i32
    return %c0_i32, %c0_i32_0 : i32, i32
  }
  func.func @transform_2(%arg0: i32) -> (i32, i32) {
    %c0_i32 = arith.constant 0 : i32
    %c0_i32_0 = arith.constant 0 : i32
    %c0_i32_1 = arith.constant 0 : i32
    return %c0_i32, %c0_i32_0 : i32, i32
  }
  func.func @transform_3(%arg0: i32) -> (i32, i32) {
    %c0_i32 = arith.constant 0 : i32
    %c0_i32_0 = arith.constant 0 : i32
    %c0_i32_1 = arith.constant 0 : i32
    return %c0_i32, %c0_i32_0 : i32, i32
  }
  func.func @transform_4(%arg0: i32) -> (i32, i32) {
    %c0_i32 = arith.constant 0 : i32
    %c0_i32_0 = arith.constant 0 : i32
    %c0_i32_1 = arith.constant 0 : i32
    return %c0_i32, %c0_i32_0 : i32, i32
  }
  func.func @transform_5(%arg0: i32) -> (i32, i32) {
    %c0_i32 = arith.constant 0 : i32
    %c0_i32_0 = arith.constant 0 : i32
    %c0_i32_1 = arith.constant 0 : i32
    return %c0_i32, %c0_i32_0 : i32, i32
  }
  func.func @transform_6(%arg0: i32) -> (i32, i32) {
    %c0_i32 = arith.constant 0 : i32
    %c0_i32_0 = arith.constant 0 : i32
    %c0_i32_1 = arith.constant 0 : i32
    return %c0_i32, %c0_i32_0 : i32, i32
  }
  func.func @transform_7(%arg0: i32) -> (i32, i32) {
    %c0_i32 = arith.constant 0 : i32
    %c0_i32_0 = arith.constant 0 : i32
    return %c0_i32, %arg0 : i32, i32
  }
}

</mosaic_0001>

<bundles_post_ra>
// kernel: tpu_custom_call.1
= control target key start
LH: loop header
LB: loop body
LE: loop exit
PB: predicated region body
PF: predicated region fallthrough
CT: control target
= control target key end

     0   :  { %s564_s0 = inlined_call_operand.hbm [shape: f32[8,256], index: 0, kind: input, shape index: {}]   ;;  %s565_s1 = inlined_call_operand.hbm [shape: f32[256,128], index: 1, kind: input, shape index: {}]   ;;  %s566_s2 = inlined_call_operand.vmem [shape: f32[1,128], index: 2, kind: input, shape index: {}]   ;;  %s567_s3 = inlined_call_operand.vmem [shape: f32[1,128], index: 3, kind: input, shape index: {}]   ;;  %s568_s4 = inlined_call_operand.vmem [shape: f32[1,128], index: 4, kind: input, shape index: {}]   ;;  %s569_s5 = inlined_call_operand.vmem [shape: f32[1,128], index: 5, kind: input, shape index: {}]   ;;  %s570_s6 = inlined_call_operand.<no memory space> [shape: f32[1,1], index: 6, kind: input, shape index: {}]   ;;  %s571_s7 = inlined_call_operand.hbm [shape: f32[1,8], index: 7, kind: output, shape index: {}]  }
   0x1   :  { %v12_v0 = vstv %s570_s6 }
   0x2   :  { %13 = vst [vmem:[#allocation2] sm:$0x1] %v12_v0 }
   0x3   :  { %14 = vsyncpa [#allocation4], 0 }
   0x4   :  { %15 = vsyncpa [#allocation7], 0 }
   0x5   :  { %16 = vsyncpa [#allocation5], 0  ;;  %s458_s26 = smov [#allocation3]   ;;  %s459_s28 = smov [#allocation6]  }
   0x6   :  { %s23_s27 = sshll.u32 %s458_s26, 4  ;;  %s32_s29 = sshll.u32 %s459_s28, 4  ;;  %s24_s27 = int_to_ptr.vmem [resolvable:$true] %s23_s27  ;;  %s509_s29 = int_to_ptr.vmem [resolvable:$true] %s32_s29 }
   0x7   :  { %s386_s9 = scalar_lea.hbm %s564_s0, 256 }
   0x8   :  { %p387_p0 = scmp.ne.s32.totalorder %s564_s0, %s386_s9  ;;  %p390_p1 = scmp.lt.u32.totalorder %s386_s9, %s564_s0 }
   0xa   :  { %p392_p2 = pnand %p390_p1, %p387_p0 }
   0xc   :  { %395 = shalt.err (!%p392_p2)
}
   0xd   :  { %s396_s13 = scalar_lea.vmem %s24_s27, 256  ;;  %p401_p4 = scmp.lt.s32.totalorder %s24_s27, %s24_s27 }
   0xe   :  { %p397_p3 = scmp.ne.s32.totalorder %s24_s27, %s396_s13  ;;  %p402_p5 = scmp.lt.s32.totalorder %s396_s13, %s396_s13 }
  0x10   :  { %p403_p6 = por %p402_p5, %p401_p4 }
  0x12   :  { %p404_p7 = pnand %p403_p6, %p397_p3 }
  0x14   :  { %407 = shalt.err (!%p404_p7)
}
  0x15   :  { %26 = dma.hbm_to_vmem [thread:$0]  %s564_s0, 256, %s24_s27, [#allocation4]  }
  0x16   :  { %s408_s18 = scalar_lea.hbm %s565_s1, 4096 }
  0x17   :  { %p409_p8 = scmp.ne.s32.totalorder %s565_s1, %s408_s18  ;;  %p412_p9 = scmp.lt.u32.totalorder %s408_s18, %s565_s1 }
  0x19   :  { %p414_p10 = pnand %p412_p9, %p409_p8 }
  0x1b   :  { %417 = shalt.err (!%p414_p10)
}
  0x1c   :  { %s418_s23 = scalar_lea.vmem %s509_s29, 4096  ;;  %p423_p12 = scmp.lt.s32.totalorder %s509_s29, %s509_s29 }
  0x1d   :  { %p419_p11 = scmp.ne.s32.totalorder %s509_s29, %s418_s23  ;;  %p424_p13 = scmp.lt.s32.totalorder %s418_s23, %s418_s23 }
  0x1f   :  { %p425_p0 = por %p424_p13, %p423_p12 }
  0x21   :  { %p426_p1 = pnand %p425_p0, %p419_p11 }
  0x23   :  { %429 = shalt.err (!%p426_p1)
}
  0x24   :  { %s460_s0 = smov 128   ;;  %s461_s24 = smov 8  }
  0x25   :  { %38 = dma.hbm_to_vmem [thread:$0]  %s565_s1, 4096, %s509_s29, [#allocation7], %s460_s0, %s460_s0, %s461_s24  }
  0x26   :  { %452 = dma.done.wait [#allocation4], 256  }
  0x27   :  { %453 = vsyncadd [#allocation4], 4294967040 }
  0x28   :  { %454 = dma.done.wait [#allocation7], 4096  }
  0x29   :  { %455 = vsyncadd [#allocation7], 4294963200  ;;  %v73_v1 = vld [vmem:[#allocation6 + $0x80] sm:$0xff]  ;;  %v74_v2 = vld [vmem:[#allocation6 + $0x88] sm:$0xff]  ;;  %v462_v57 = vmov 0.0   ;;  %vm463_vm0 = vmmov 0  }
  0x2a   :  { %v57_v3 = vld [vmem:[#allocation6] sm:$0xff]  ;;  %v342_v4 = vpack.c.bf16 %v74_v2, %v73_v1  ;;  %v58_v5 = vld [vmem:[#allocation6 + $0x8] sm:$0xff]  ;;  %v75_v6 = vld [vmem:[#allocation6 + $0x90] sm:$0xff]  ;;  %337 = vmatprep.subr.mxu1 %v462_v57  ;;  %339 = vmatprep.mubr.msk.f32.mxu1 %vm463_vm0, %v462_v57  ;;  %v464_v59 = vmov 0   ;;  %vm279_vm1 = vcmask 57344  }
  0x2b   :  { %v76_v7 = vld [vmem:[#allocation6 + $0x98] sm:$0xff]  ;;  %v344_v8 = vpack.c.bf16 %v58_v5, %v57_v3  ;;  %v59_v10 = vld [vmem:[#allocation6 + $0x10] sm:$0xff]  ;;  %v77_v12 = vld [vmem:[#allocation6 + $0xa0] sm:$0xff]  ;;  %382 = vset.pattern.permute.xlu1 %v464_v59  ;;  %383 = vset.pattern.permute.xlu0 %v464_v59 }
  0x2c   :  { %v346_v9 = vpack.c.bf16 %v76_v7, %v75_v6  ;;  %v60_v11 = vld [vmem:[#allocation6 + $0x18] sm:$0xff]  ;;  %343 = vmatprep.subr.bf16.mxu0 %v342_v4  ;;  %v78_v13 = vld [vmem:[#allocation6 + $0xa8] sm:$0xff]  ;;  %v61_v16 = vld [vmem:[#allocation6 + $0x20] sm:$0xff] }
  0x2d   :  { %345 = vmatpush3.bf16.msra.mxu0 %v344_v8  ;;  %v348_v14 = vpack.c.bf16 %v60_v11, %v59_v10  ;;  %v350_v15 = vpack.c.bf16 %v78_v13, %v77_v12  ;;  %v62_v17 = vld [vmem:[#allocation6 + $0x28] sm:$0xff]  ;;  %v79_v18 = vld [vmem:[#allocation6 + $0xb0] sm:$0xff]  ;;  %v80_v19 = vld [vmem:[#allocation6 + $0xb8] sm:$0xff]  ;;  %v205_v13 = vlaneseq }
  0x2e   :  { %347 = vmatprep.subr.bf16.mxu0 %v346_v9  ;;  %v352_v20 = vpack.c.bf16 %v62_v17, %v61_v16  ;;  %v354_v21 = vpack.c.bf16 %v80_v19, %v79_v18  ;;  %v63_v22 = vld [vmem:[#allocation6 + $0x30] sm:$0xff]  ;;  %v64_v23 = vld [vmem:[#allocation6 + $0x38] sm:$0xff]  ;;  %v81_v24 = vld [vmem:[#allocation6 + $0xc0] sm:$0xff] }
  0x2f   :  { %v82_v25 = vld [vmem:[#allocation6 + $0xc8] sm:$0xff]  ;;  %v56_v26 = vld [vmem:[#allocation3 + $0x8] sm:$0xff]  ;;  %v356_v27 = vpack.c.bf16 %v64_v23, %v63_v22  ;;  %v65_v29 = vld [vmem:[#allocation6 + $0x40] sm:$0xff] }
  0x30   :  { %162 = vmatprep.mubr.f32.mxu0 %v56_v26  ;;  %v358_v28 = vpack.c.bf16 %v82_v25, %v81_v24  ;;  %v66_v30 = vld [vmem:[#allocation6 + $0x48] sm:$0xff]  ;;  %v83_v31 = vld [vmem:[#allocation6 + $0xd0] sm:$0xff]  ;;  %v84_v32 = vld [vmem:[#allocation6 + $0xd8] sm:$0xff] }
  0x31   :  { %349 = vmatpush3.bf16.msra.mxu0 %v348_v14  ;;  %v360_v33 = vpack.c.bf16 %v66_v30, %v65_v29  ;;  %v362_v34 = vpack.c.bf16 %v84_v32, %v83_v31  ;;  %v67_v35 = vld [vmem:[#allocation6 + $0x50] sm:$0xff]  ;;  %v68_v36 = vld [vmem:[#allocation6 + $0x58] sm:$0xff]  ;;  %v85_v37 = vld [vmem:[#allocation6 + $0xe0] sm:$0xff]  ;;  %v206_v14 = vshrl.u32 %v205_v13, 7 }
  0x32   :  { %351 = vmatprep.subr.bf16.mxu0 %v350_v15  ;;  %v86_v38 = vld [vmem:[#allocation6 + $0xe8] sm:$0xff]  ;;  %v364_v39 = vpack.c.bf16 %v68_v36, %v67_v35  ;;  %v69_v41 = vld [vmem:[#allocation6 + $0x60] sm:$0xff]  ;;  %v87_v43 = vld [vmem:[#allocation6 + $0xf0] sm:$0xff] }
  0x33   :  { %v366_v40 = vpack.c.bf16 %v86_v38, %v85_v37  ;;  %v70_v42 = vld [vmem:[#allocation6 + $0x68] sm:$0xff]  ;;  %v88_v44 = vld [vmem:[#allocation6 + $0xf8] sm:$0xff]  ;;  %v71_v47 = vld [vmem:[#allocation6 + $0x70] sm:$0xff]  ;;  %v207_v15 = vsub.s32 0, %v206_v14 }
  0x34   :  { %v368_v45 = vpack.c.bf16 %v70_v42, %v69_v41  ;;  %v370_v46 = vpack.c.bf16 %v88_v44, %v87_v43  ;;  %v72_v48 = vld [vmem:[#allocation6 + $0x78] sm:$0xff]  ;;  %v55_v50 = vld [vmem:[#allocation3] sm:$0xff]  ;;  %v297_v52 = vld [vmem:[%s566_s2] ss:$0 sm:$0xff] }
  0x35   :  { %353 = vmatpush3.bf16.msra.mxu0 %v352_v20  ;;  %v372_v49 = vpack.c.bf16 %v72_v48, %v71_v47  ;;  %v199_v58 = vld [vmem:[#allocation2] sm:$0x1] }
  0x36   :  { %355 = vmatprep.subr.bf16.mxu0 %v354_v21  ;;  %202 = vperm.xlu1 %382, %v199_v58   ;;  %v298_v6 = vld [vmem:[%s567_s3] ss:$0 sm:$0xff]  ;;  %s465_s3 = smov [#allocation8]  }
  0x37   :  { %v299_v8 = vld [vmem:[%s568_s4] ss:$0 sm:$0xff]  ;;  %s287_s10 = sshll.u32 %s465_s3, 4  ;;  %s288_s10 = int_to_ptr.vmem [resolvable:$true] %s287_s10 }
  0x38   :  { %v198_v12 = vld [vmem:[%s569_s5] sm:$0x1]  ;;  %s430_s4 = scalar_lea.vmem %s288_s10, 16  ;;  %s434_s11 = scalar_lea.vmem %s288_s10, 32 }
  0x39   :  { %357 = vmatpush3.bf16.msra.mxu0 %v356_v27  ;;  %p431_p2 = scmp.ne.s32.totalorder %s288_s10, %s430_s4  ;;  %p435_p3 = scmp.lt.s32.totalorder %s288_s10, %s288_s10 }
  0x3a   :  { %359 = vmatprep.subr.bf16.mxu0 %v358_v28  ;;  %p436_p4 = scmp.lt.s32.totalorder %s434_s11, %s430_s4 }
  0x3c   :  { %p437_p5 = por %p436_p4, %p435_p3 }
  0x3d   :  { %361 = vmatpush3.bf16.msra.mxu0 %v360_v33 }
  0x3e   :  { %363 = vmatprep.subr.bf16.mxu0 %v362_v34  ;;  %p438_p6 = pnand %p437_p5, %p431_p2 }
  0x41   :  { %365 = vmatpush3.bf16.msra.mxu0 %v364_v39 }
  0x42   :  { %367 = vmatprep.subr.bf16.mxu0 %v366_v40 }
  0x45   :  { %369 = vmatpush3.bf16.msra.mxu0 %v368_v45 }
  0x46   :  { %371 = vmatprep.subr.bf16.mxu0 %v370_v46 }
  0x49   :  { %373 = vmatpush3.bf16.msra.mxu0 %v372_v49 }
  0x4c   :  { %163 = vmatmul.mubr.f32.vlgmr.msra.gmra.mrb[0].mxu0 %v55_v50 }
  0xb5   :  { %v203_v16 = vpop.permute.xlu1 %202 }
  0xb6   :  { %v208_v17 = vrot.slane %v203_v16, %v207_v15 }
 0x11f   :  { %v332_v51 = vpop.f32.mrb[0].mxu0 }
 0x120   :  { %v333_v53 = vpop.f32.mrb[1].mxu0 }
 0x121   :  { %v334_v54 = vadd.f32 %v333_v53, %v332_v51 }
 0x123   :  { %v165_v55 = vadd.f32 %v334_v54, %v297_v52 }
 0x125   :  { %168 = vadd.xlane.f32.xlu0 %v165_v55  ;;  %v172_v56 = vmul.f32 %v165_v55, %v165_v55 }
 0x129   :  { %173 = vadd.xlane.f32.xlu0 %v172_v56 }
 0x1b2   :  { %v169_v60 = vpop.xlane.xlu0 %168 }
 0x1b3   :  { %v171_v61 = vmul.f32 0.0078125, %v169_v60 }
 0x1b5   :  { %v176_v63 = vmul.f32 %v171_v61, %v171_v61  ;;  %v179_v4 = vsub.f32 %v165_v55, %v171_v61 }
 0x1b6   :  { %v174_v62 = vpop.xlane.xlu0 %173 }
 0x1b7   :  { %v175_v0 = vmul.f32 0.0078125, %v174_v62 }
 0x1b9   :  { %v177_v1 = vsub.f32 %v175_v0, %v176_v63 }
 0x1bb   :  { %v178_v2 = vmax.f32 %v177_v1, 0.0 }
 0x1bd   :  { %v180_v3 = vadd.f32 1e-05, %v178_v2 }
 0x1bf   :  { %384 = vrsqrt.f32 %v180_v3 }
 0x1c9   :  { %v385_v5 = vpop.eup %384 }
 0x1ca   :  { %v182_v7 = vmul.f32 %v385_v5, %v179_v4 }
 0x1cc   :  { %v189_v9 = vmul.f32 %v298_v6, %v182_v7 }
 0x1ce   :  { %v196_v10 = vadd.f32 %v299_v8, %v189_v9 }
 0x1d0   :  { %v197_v11 = vmax.f32 %v196_v10, 0.0 }
 0x1d2   :  { %338 = vmatpush3.xpose.msra.mxu1 %v197_v11 }
 0x1d5   :  { %340 = vmatmul.mubr.f32.vlgmr.msra.gmra.mrb[0].mxu1 %v198_v12 }
 0x2a8   :  { %v275_v18 = vpop.f32.mrb[0].mxu1 }
 0x2a9   :  { %v276_v19 = vadd.f32 %v275_v18, %v208_v17  ;;  %v341_v20 = vpop.f32.mrb[1].mxu1 }
 0x2ab   :  { %280 = vst.msk [vmem:[#allocation8] sm:$0x1] %vm279_vm1, %v276_v19 }
 0x2ac   :  { %441 = shalt.err (!%p438_p6)
}
 0x2ad   :  { %s442_s12 = scalar_lea.hbm %s571_s7, 16 }
 0x2ae   :  { %p443_p7 = scmp.ne.s32.totalorder %s571_s7, %s442_s12  ;;  %p446_p8 = scmp.lt.u32.totalorder %s442_s12, %s571_s7 }
 0x2b0   :  { %p448_p9 = pnand %p446_p8, %p443_p7 }
 0x2b2   :  { %451 = shalt.err (!%p448_p9)
}
 0x2b3   :  { %290 = dma.vmem_to_hbm [thread:$0]  %s288_s10, 16, %s571_s7, [#allocation5]  }
 0x2b4   :  { %456 = dma.done.wait [#allocation5], 16  }
 0x2b5   :  { %457 = vsyncadd [#allocation5], 4294967280 }
 0x2b6   :  { %294 = vsyncpa [#allocation4], 1 }
 0x2b7   :  { %295 = vsyncpa [#allocation7], 1 }
 0x2b8   :  { %296 = vsyncpa [#allocation5], 1 }

</bundles_post_ra>
